<compile_context>
chip_gen: v7x
topology: tpu7x:2x2x1
jax: 0.10.0
libtpu: 0.0.40
codegen_flags: <defaults>
</compile_context>

<pallas_src>
import functools

import jax
import jax.numpy as jnp
from jax.experimental import pallas as pl
from jax.experimental.pallas import tpu as pltpu

LANES = 128


def linear_kernel(w_ref, b_ref, x_ref, o_ref):
    # w_ref, b_ref: SMEM scalars (shape (1,)); x_ref, o_ref: (tile_r, 128) VMEM tiles.
    o_ref[...] = x_ref[...] * w_ref[0] + b_ref[0]


@functools.partial(jax.jit, static_argnames=("tile_rows",))
def linear_forward(x, weight, bias, tile_rows=4096):
    """Pallas forward for nn.Linear(1, 1).

    x:      (N, 1) float32
    weight: (1, 1) float32
    bias:   (1,)   float32
    returns (N, 1) float32
    """
    n, in_f = x.shape
    out_f, in_f2 = weight.shape
    assert in_f == 1 and in_f2 == 1 and out_f == 1, "kernel specialized to Linear(1, 1)"

    # --- lane-dense repack: (N, 1) -> (rows, 128), pad only to next multiple of 128 ---
    rows = max(-(-n // LANES), 1)          # ceil(n / 128)
    pad = rows * LANES - n                 # <= 127 elements
    flat = x.reshape(-1)
    if pad:
        flat = jnp.pad(flat, (0, pad))
    x2d = flat.reshape(rows, LANES)

    # --- tile selection ---
    if rows <= 8:
        tile_r = rows                      # full extent (allowed even if < 8)
    else:
        tile_r = max(8, (int(tile_rows) // 8) * 8)        # multiple of 8 sublanes
        # keep grid >= 2 when there's enough work (v7x: shards across both TCs)
        half = (((rows + 1) // 2 + 7) // 8) * 8
        tile_r = min(tile_r, half)
    num_tiles = pl.cdiv(rows, tile_r)      # partial trailing tile handled by Pallas

    w_s = weight.reshape(1).astype(x.dtype)   # SMEM scalar
    b_s = bias.reshape(1).astype(x.dtype)     # SMEM scalar

    out2d = pl.pallas_call(
        linear_kernel,
        out_shape=jax.ShapeDtypeStruct((rows, LANES), x.dtype),
        grid_spec=pltpu.PrefetchScalarGridSpec(
            num_scalar_prefetch=0,
            grid=(num_tiles,),
            in_specs=[
                pl.BlockSpec(memory_space=pltpu.MemorySpace.SMEM),  # weight scalar
                pl.BlockSpec(memory_space=pltpu.MemorySpace.SMEM),  # bias scalar
                pl.BlockSpec((tile_r, LANES), lambda i: (i, 0)),    # x tile
            ],
            out_specs=pl.BlockSpec((tile_r, LANES), lambda i: (i, 0)),
        ),
        # Reuse the padded intermediate's HBM buffer for the output (free win);
        # skipped on the no-pad path where x2d may alias the entry parameter.
        input_output_aliases=({2: 0} if pad else {}),
        compiler_params=pltpu.CompilerParams(
            dimension_semantics=("parallel",),
        ),
    )(w_s, b_s, x2d)

    if pad == 0:
        return out2d.reshape(n, out_f)             # no-copy fast path
    return out2d.reshape(-1)[:n].reshape(n, out_f)


if __name__ == "__main__":
    key = jax.random.PRNGKey(0)
    kx, kw, kb = jax.random.split(key, 3)

    # nn.Linear(1, 1): weight shape (1, 1), bias shape (1,)
    weight = jax.random.normal(kw, (1, 1), dtype=jnp.float32)
    bias = jax.random.normal(kb, (1,), dtype=jnp.float32)

    # Primary check: small batch, matches the module's typical usage.
    n = 8
    x = jax.random.normal(kx, (n, 1), dtype=jnp.float32)
    y = jax.block_until_ready(linear_forward(x, weight, bias))
    y_ref = x @ weight.T + bias
    assert y.shape == (n, 1)
    assert jnp.allclose(y, y_ref, atol=1e-5, rtol=1e-5)

    # Non-multiple-of-128 N: minimal pad, multi-tile grid with a partial trailing tile.
    n2 = 3000
    x2 = jax.random.normal(kx, (n2, 1), dtype=jnp.float32)
    y2 = jax.block_until_ready(linear_forward(x2, weight, bias))
    assert y2.shape == (n2, 1)
    assert jnp.allclose(y2, x2 @ weight.T + bias, atol=1e-5, rtol=1e-5)

    # Multiple-of-128 N (no-copy fast path) + non-multiple-of-8 tile_rows (rounded down).
    n3 = 2048
    x3 = jax.random.normal(kx, (n3, 1), dtype=jnp.float32)
    y3 = jax.block_until_ready(linear_forward(x3, weight, bias, tile_rows=100))
    assert y3.shape == (n3, 1)
    assert jnp.allclose(y3, x3 @ weight.T + bias, atol=1e-5, rtol=1e-5)

    print("KERNEL_OK")
</pallas_src>

<mosaic_0001>
module attributes {stable_mosaic.version = 11 : i64} {
  func.func @linear_kernel(%arg0: i32, %arg1: memref<1xf32, #tpu.memory_space<smem>>, %arg2: memref<1xf32, #tpu.memory_space<smem>>, %arg3: memref<1x128xf32, #tpu.memory_space<vmem>>, %arg4: memref<1x128xf32, #tpu.memory_space<vmem>>) attributes {dimension_semantics = [#tpu.dimension_semantics<parallel>], iteration_bounds = array<i64: 1>, scalar_prefetch = 0 : i64, scratch_operands = 0 : i64, tpu.core_type = #tpu.core_type<tc>, window_params = [{transform_indices = @transform_0, window_bounds = array<i64: 1>}, {transform_indices = @transform_1, window_bounds = array<i64: 1>}, {transform_indices = @transform_2, window_bounds = array<i64: 1, 128>}, {transform_indices = @transform_3, window_bounds = array<i64: 1, 128>}]} {
    %c0 = arith.constant 0 : index
    %c0_0 = arith.constant 0 : index
    %0 = vector.load %arg3[%c0, %c0_0] : memref<1x128xf32, #tpu.memory_space<vmem>>, vector<1x128xf32>
    %c0_1 = arith.constant 0 : index
    %1 = memref.load %arg1[%c0_1] : memref<1xf32, #tpu.memory_space<smem>>
    %2 = vector.broadcast %1 : f32 to vector<1x128xf32>
    %3 = arith.mulf %0, %2 : vector<1x128xf32>
    %c0_2 = arith.constant 0 : index
    %4 = memref.load %arg2[%c0_2] : memref<1xf32, #tpu.memory_space<smem>>
    %5 = vector.broadcast %4 : f32 to vector<1x128xf32>
    %6 = arith.addf %3, %5 : vector<1x128xf32>
    %c0_3 = arith.constant 0 : index
    %c0_4 = arith.constant 0 : index
    %7 = vector.load %arg4[%c0_3, %c0_4] : memref<1x128xf32, #tpu.memory_space<vmem>>, vector<1x128xf32>
    tpu.vector_store %arg4[%c0_3, %c0_4], %6 {strides = array<i32>} : memref<1x128xf32, #tpu.memory_space<vmem>>, vector<1x128xf32>,
    return
  }
  func.func @transform_0(%arg0: i32) -> i32 {
    %c0_i32 = arith.constant 0 : i32
    %c0_i32_0 = arith.constant 0 : i32
    return %c0_i32 : i32
  }
  func.func @transform_1(%arg0: i32) -> i32 {
    %c0_i32 = arith.constant 0 : i32
    %c0_i32_0 = arith.constant 0 : i32
    return %c0_i32 : i32
  }
  func.func @transform_2(%arg0: i32) -> (i32, i32) {
    %c0_i32 = arith.constant 0 : i32
    %c0_i32_0 = arith.constant 0 : i32
    return %arg0, %c0_i32 : i32, i32
  }
  func.func @transform_3(%arg0: i32) -> (i32, i32) {
    %c0_i32 = arith.constant 0 : i32
    %c0_i32_0 = arith.constant 0 : i32
    return %arg0, %c0_i32 : i32, i32
  }
}

</mosaic_0001>

<bundles_post_ra>
// kernel: linear_forward.1
= control target key start
LH: loop header
LB: loop body
LE: loop exit
PB: predicated region body
PF: predicated region fallthrough
CT: control target
= control target key end

     0   :  { %s60_s0 = inlined_call_operand.<no memory space> [shape: f32[1], index: 0, kind: input, shape index: {}]   ;;  %s61_s1 = inlined_call_operand.<no memory space> [shape: f32[1], index: 1, kind: input, shape index: {}]   ;;  %s62_s2 = inlined_call_operand.vmem [shape: f32[1,128], index: 2, kind: input, shape index: {}, may-alias: {2,3}]   ;;  %s63_s3 = inlined_call_operand.vmem [shape: f32[1,128], index: 3, kind: output, shape index: {}, may-alias: {2,3}]  }
   0x1   :  { %v16_v0 = vld [vmem:[%s62_s2] sm:$0x1]  ;;  %v18_v1 = vstv %s60_s0  ;;  %v21_v2 = vstv %s61_s1 }
   0x2   :  { %v19_v3 = vmul.f32 %v18_v1, %v16_v0 }
   0x4   :  { %v22_v4 = vadd.f32 %v21_v2, %v19_v3 }
   0x6   :  { %23 = vst [vmem:[%s63_s3] sm:$0x1] %v22_v4 }

</bundles_post_ra>
